<compile_context>
chip_gen: v7x
topology: tpu7x:2x2x1
jax: 0.10.0
libtpu: 0.0.40
codegen_flags: <defaults>
</compile_context>

<pallas_src>
import functools

import jax
import jax.numpy as jnp
from jax.experimental import pallas as pl
from jax.experimental.pallas import tpu as pltpu


VMEM_LIMIT = 48 * 1024 * 1024   # < v7x's 64 MiB/TC physical VMEM; ample on v5e/v6e
BT = 8                          # batch rows packed per conv grid step


# --------------------------------------------------------------------------
# pltpu.roll direction probe (run once, eagerly, before any jit trace)
# --------------------------------------------------------------------------
_PREV_SHIFT = None


def _roll_prev_shift():
    """Returns the pltpu.roll shift that realises jnp.roll(x, +1, axis=0)."""
    global _PREV_SHIFT
    if _PREV_SHIFT is None:
        def probe(x_ref, o_ref):
            o_ref[...] = pltpu.roll(x_ref[...], 1, 0)

        x = jax.lax.broadcasted_iota(jnp.int32, (8, 128), 0)
        y = pl.pallas_call(
            probe, out_shape=jax.ShapeDtypeStruct((8, 128), jnp.int32))(x)
        v = int(y[1, 0])
        if v == 0:
            _PREV_SHIFT = 1      # pltpu.roll(x, 1)[i] == x[i-1] (jnp.roll convention)
        elif v == 2:
            _PREV_SHIFT = -1     # opposite convention
        else:
            raise RuntimeError(f"unexpected pltpu.roll semantics (probe={v})")
    return _PREV_SHIFT


# --------------------------------------------------------------------------
# fused conv -> relu -> maxpool (x3), batch-packed
# --------------------------------------------------------------------------
def _shift_rows(x, jnp_shift, prev_shift):
    """jnp.roll(x, jnp_shift, axis=0) regardless of the hardware rotate sign."""
    r = x.shape[0]
    return pltpu.roll(x, (jnp_shift * prev_shift) % r, 0)


def _conv_taps(x, seq_len, bt, prev_shift):
    """Left/right neighbours along the flattened (bt*seq_len, C) row axis.

    Rows at per-batch-row boundaries are masked to zero (the conv's (1,0)
    padding) which also prevents leakage between packed batch rows.
    """
    rows = jax.lax.broadcasted_iota(jnp.int32, (x.shape[0], 1), 0)
    first = rows == 0
    last = rows == (seq_len - 1)
    for b in range(1, bt):
        first = jnp.logical_or(first, rows == b * seq_len)
        last = jnp.logical_or(last, rows == (b + 1) * seq_len - 1)
    x_prev = jnp.where(first, 0.0, _shift_rows(x, 1, prev_shift))
    x_next = jnp.where(last, 0.0, _shift_rows(x, -1, prev_shift))
    return x_prev, x_next


def _pool2x1(y, pool_ref, prev_shift):
    """MaxPool((2,1)): pooled[m] = max(y[2m], y[2m+1]) via roll+max + one
    stride-2 read (odd rows of the rolled max are never read, so batch-row
    boundaries need no masking because the per-row lengths are even)."""
    z = jnp.maximum(y, _shift_rows(y, -1, prev_shift))
    pool_ref[...] = z
    return pool_ref[pl.ds(0, y.shape[0] // 2, stride=2), :]


def conv_stack_kernel(x_ref, w1_ref, b1_ref, w2_ref, b2_ref, w3_ref, b3_ref,
                      o_ref, cat2, cat3, p1, p2, p3, *, bt, seq, prev_shift):
    # ---- stage 1: Conv(1->32) + ReLU + pool;  Cin=1 -> VPU broadcast path ----
    x = x_ref[...]                                       # (bt*seq, 1)
    xp, xn = _conv_taps(x, seq, bt, prev_shift)
    w1 = w1_ref[...]                                     # (3, 32): rows = taps l-1,l,l+1
    y = xp * w1[0:1] + x * w1[1:2] + xn * w1[2:3] + b1_ref[...]
    h = _pool2x1(jnp.maximum(y, 0.0), p1, prev_shift)    # (bt*seq/2, 32)

    # ---- stage 2: Conv(32->64); taps concatenated on lanes -> one K=96 matmul ----
    xp, xn = _conv_taps(h, seq // 2, bt, prev_shift)
    cat2[:, 0:32] = xp
    cat2[:, 32:64] = h
    cat2[:, 64:96] = xn
    y = jnp.dot(cat2[...], w2_ref[...],
                preferred_element_type=jnp.float32) + b2_ref[...]
    h = _pool2x1(jnp.maximum(y, 0.0), p2, prev_shift)    # (bt*seq/4, 64)

    # ---- stage 3: Conv(64->128); one K=192 matmul ----
    xp, xn = _conv_taps(h, seq // 4, bt, prev_shift)
    cat3[:, 0:64] = xp
    cat3[:, 64:128] = h
    cat3[:, 128:192] = xn
    y = jnp.dot(cat3[...], w3_ref[...],
                preferred_element_type=jnp.float32) + b3_ref[...]
    h = _pool2x1(jnp.maximum(y, 0.0), p3, prev_shift)    # (bt*seq/8, 128)

    o_ref[...] = h.astype(o_ref.dtype)


def conv_stack(x2, params, *, batch, seq):
    """x2: (batch*seq, 1) f32, batch % BT == 0 -> (batch*seq//8, 128) f32."""
    assert batch % BT == 0 and seq % 8 == 0
    prev_shift = _roll_prev_shift()
    lo = seq // 8                                        # 41 for seq=328
    w2c = params["w2"].reshape(3 * 32, 64)               # [prev | curr | next] tap rows
    w3c = params["w3"].reshape(3 * 64, 128)
    kernel = functools.partial(conv_stack_kernel, bt=BT, seq=seq,
                               prev_shift=prev_shift)
    return pl.pallas_call(
        kernel,
        out_shape=jax.ShapeDtypeStruct((batch * lo, 128), jnp.float32),
        grid_spec=pltpu.PrefetchScalarGridSpec(
            num_scalar_prefetch=0,
            grid=(batch // BT,),
            in_specs=[
                pl.BlockSpec((BT * seq, 1), lambda i: (i, 0)),
                pl.BlockSpec((3, 32), lambda i: (0, 0)),
                pl.BlockSpec((1, 32), lambda i: (0, 0)),
                pl.BlockSpec((96, 64), lambda i: (0, 0)),
                pl.BlockSpec((1, 64), lambda i: (0, 0)),
                pl.BlockSpec((192, 128), lambda i: (0, 0)),
                pl.BlockSpec((1, 128), lambda i: (0, 0)),
            ],
            out_specs=pl.BlockSpec((BT * lo, 128), lambda i: (i, 0)),
            scratch_shapes=[
                pltpu.VMEM((BT * seq // 2, 96), jnp.float32),    # cat2 (fused taps)
                pltpu.VMEM((BT * seq // 4, 192), jnp.float32),   # cat3 (fused taps)
                pltpu.VMEM((BT * seq, 32), jnp.float32),         # pool scratch 1
                pltpu.VMEM((BT * seq // 2, 64), jnp.float32),    # pool scratch 2
                pltpu.VMEM((BT * seq // 4, 128), jnp.float32),   # pool scratch 3
            ],
        ),
        compiler_params=pltpu.CompilerParams(
            dimension_semantics=("parallel",),
            vmem_limit_bytes=VMEM_LIMIT),
    )(x2, params["w1"], params["b1"].reshape(1, 32),
      w2c, params["b2"].reshape(1, 64),
      w3c, params["b3"].reshape(1, 128))


# --------------------------------------------------------------------------
# fully-connected kernels
# --------------------------------------------------------------------------
def fc1_kernel(x_ref, w_ref, b_ref, o_ref):
    x = x_ref[...].astype(jnp.bfloat16)
    y = jnp.dot(x, w_ref[...], preferred_element_type=jnp.float32) + b_ref[...]
    o_ref[...] = jnp.maximum(y, 0.0).astype(o_ref.dtype)


def fc1(x, w, b, *, tn=1024):
    # tn=1024 -> 2 "parallel" N tiles: keeps v7x's two TensorCores each
    # streaming half of the bf16 weight; 2x10.75 MiB double-buffered < 48 MiB.
    B, K = x.shape
    N = w.shape[1]
    return pl.pallas_call(
        fc1_kernel,
        out_shape=jax.ShapeDtypeStruct((B, N), jnp.float32),
        grid_spec=pltpu.PrefetchScalarGridSpec(
            num_scalar_prefetch=0,
            grid=(N // tn,),
            in_specs=[
                pl.BlockSpec((B, K), lambda j: (0, 0)),
                pl.BlockSpec((K, tn), lambda j: (0, j)),
                pl.BlockSpec((1, tn), lambda j: (0, j)),
            ],
            out_specs=pl.BlockSpec((B, tn), lambda j: (0, j)),
        ),
        compiler_params=pltpu.CompilerParams(
            dimension_semantics=("parallel",),
            vmem_limit_bytes=VMEM_LIMIT),
    )(x, w, b.reshape(1, N))


def fc23_kernel(x_ref, w2_ref, b2_ref, w3_ref, b3_ref, o_ref):
    x = x_ref[...].astype(jnp.bfloat16)
    h = jnp.dot(x, w2_ref[...], preferred_element_type=jnp.float32) + b2_ref[...]
    h = jnp.maximum(h, 0.0)
    # TODO(synk): nn.Dropout(0.3) is identity in eval/inference mode; omitted.
    y = jnp.dot(h.astype(jnp.bfloat16), w3_ref[...],
                preferred_element_type=jnp.float32) + b3_ref[...]
    o_ref[...] = y.astype(o_ref.dtype)


def fc23(x, w2, b2, w3, b3):
    B, K = x.shape
    H = w2.shape[1]
    return pl.pallas_call(
        fc23_kernel,
        out_shape=jax.ShapeDtypeStruct((B, 1), jnp.float32),
        grid_spec=pltpu.PrefetchScalarGridSpec(
            num_scalar_prefetch=0,
            grid=(1,),
            in_specs=[
                pl.BlockSpec((B, K), lambda i: (0, 0)),
                pl.BlockSpec((K, H), lambda i: (0, 0)),
                pl.BlockSpec((1, H), lambda i: (0, 0)),
                pl.BlockSpec((H, 1), lambda i: (0, 0)),
                pl.BlockSpec((1, 1), lambda i: (0, 0)),
            ],
            out_specs=pl.BlockSpec((B, 1), lambda i: (0, 0)),
        ),
        compiler_params=pltpu.CompilerParams(
            dimension_semantics=("arbitrary",),
            vmem_limit_bytes=VMEM_LIMIT),
    )(x, w2, b2.reshape(1, H), w3, b3.reshape(1, 1))


# --------------------------------------------------------------------------
# parameters, reference, forward
# --------------------------------------------------------------------------
def init_params(key):
    ks = jax.random.split(key, 12)

    def normal(k, shape, fan_in):
        return jax.random.normal(k, shape, jnp.float32) / jnp.sqrt(fan_in)

    # Conv weights stored as (3, [Cin,] Cout): w[k, ci, co] == torch_w[co, ci, k, 0]
    # (k=0 multiplies x[l-1], k=1 x[l], k=2 x[l+1]).
    w1 = normal(ks[0], (3, 32), 3.0)
    b1 = normal(ks[1], (32,), 3.0)
    w2 = normal(ks[2], (3, 32, 64), 96.0)
    b2 = normal(ks[3], (64,), 96.0)
    w3 = normal(ks[4], (3, 64, 128), 192.0)
    b3 = normal(ks[5], (128,), 192.0)

    # fc1: generated in torch layout (rows channel-major: c*41 + l == torch_w.T
    # row order from x.view(-1, 128*41)), then permuted ONCE to the conv
    # kernel's natural L-major (l*128 + c) flatten order -> no runtime transpose.
    wf1_torch_t = normal(ks[6], (128 * 41, 2048), 128.0 * 41.0)
    wf1 = (wf1_torch_t.reshape(128, 41, 2048)
           .transpose(1, 0, 2).reshape(41 * 128, 2048))

    return {
        "w1": w1, "b1": b1, "w2": w2, "b2": b2, "w3": w3, "b3": b3,
        # FC weights in bf16: fc1's weight stream dominates the forward (HBM
        # bound on all generations); bf16 halves it.  f32 accumulation on MXU.
        "wf1": wf1.astype(jnp.bfloat16),
        "bf1": normal(ks[7], (2048,), 128.0 * 41.0),
        "wf2": normal(ks[8], (2048, 512), 2048.0).astype(jnp.bfloat16),
        "bf2": normal(ks[9], (512,), 2048.0),
        "wf3": normal(ks[10], (512, 1), 512.0).astype(jnp.bfloat16),
        "bf3": normal(ks[11], (1,), 512.0),
    }


@jax.jit
def reference_forward(x, params):
    """Pure-JAX (XLA) reference with the same parameter layout / precision policy."""
    B = x.shape[0]
    h = x[:, :, None]

    def conv_relu_pool(h, w, b):
        hp = jnp.pad(h, ((0, 0), (1, 1), (0, 0)))
        dot = lambda a, wk: jax.lax.dot_general(
            a, wk, (((2,), (0,)), ((), ())),
            precision=jax.lax.Precision.HIGHEST,
            preferred_element_type=jnp.float32)
        y = dot(hp[:, :-2], w[0]) + dot(hp[:, 1:-1], w[1]) + dot(hp[:, 2:], w[2]) + b
        y = jnp.maximum(y, 0.0)
        Bq, L, C = y.shape
        return jnp.max(y.reshape(Bq, L // 2, 2, C), axis=2)

    h = conv_relu_pool(h, params["w1"][:, None, :], params["b1"])
    h = conv_relu_pool(h, params["w2"], params["b2"])
    h = conv_relu_pool(h, params["w3"], params["b3"])
    h = h.reshape(B, -1)

    def fc(a, w, b):
        return jnp.dot(a.astype(jnp.bfloat16), w,
                       preferred_element_type=jnp.float32) + b

    h = jnp.maximum(fc(h, params["wf1"], params["bf1"]), 0.0)
    h = jnp.maximum(fc(h, params["wf2"], params["bf2"]), 0.0)
    return fc(h, params["wf3"], params["bf3"])


@jax.jit
def net_forward(x, params):
    B, L = x.shape
    # Pad batch to a multiple of BT so all conv tiles/rolls stay (8,128)-aligned;
    # padded rows are dropped at the end (batch rows are independent).
    Bp = ((B + BT - 1) // BT) * BT
    if Bp != B:
        x = jnp.pad(x, ((0, Bp - B), (0, 0)))
    lo = L // 8
    # torch: x.unsqueeze(1).unsqueeze(3) -> (B,1,L,1) NCHW; here flattened (B*L, 1).
    h = conv_stack(x.reshape(Bp * L, 1), params, batch=Bp, seq=L)   # (Bp*lo, 128)
    h = h.reshape(Bp, lo * 128)                # L-major flatten, matches permuted wf1
    h = fc1(h, params["wf1"], params["bf1"])   # (Bp, 2048), ReLU fused
    out = fc23(h, params["wf2"], params["bf2"],
               params["wf3"], params["bf3"])   # (Bp, 1)
    return out[:B]


if __name__ == "__main__":
    _roll_prev_shift()   # resolve the hardware rotate direction before tracing

    key = jax.random.PRNGKey(0)
    kx, kp = jax.random.split(key)
    B = 2
    # F must be 328 so that after three /2 pools the flatten is 128*41.
    x = jax.random.normal(kx, (B, 328), jnp.float32)
    params = init_params(kp)

    y = net_forward(x, params)
    jax.block_until_ready(y)
    assert y.shape == (B, 1)

    y_ref = reference_forward(x, params)
    jax.block_until_ready(y_ref)
    err = float(jnp.max(jnp.abs(y - y_ref)))
    scale = max(1.0, float(jnp.max(jnp.abs(y_ref))))
    assert err <= 5e-2 * scale, f"mismatch vs reference: max abs err {err} (scale {scale})"

    print("KERNEL_OK")
</pallas_src>

<mosaic_0001>
module attributes {stable_mosaic.version = 11 : i64} {
  func.func @probe(%arg0: memref<8x128xi32, #tpu.memory_space<vmem>>, %arg1: memref<8x128xi32, #tpu.memory_space<vmem>>) attributes {dimension_semantics = [], scalar_prefetch = 0 : i64, scratch_operands = 0 : i64, tpu.core_type = #tpu.core_type<tc>} {
    %c0 = arith.constant 0 : index
    %c0_0 = arith.constant 0 : index
    %0 = vector.load %arg0[%c0, %c0_0] : memref<8x128xi32, #tpu.memory_space<vmem>>, vector<8x128xi32>
    %c1_i32 = arith.constant 1 : i32
    %1 = tpu.dynamic_rotate %0 by %c1_i32 dim 0 : vector<8x128xi32>, i32 -> vector<8x128xi32>
    %c0_1 = arith.constant 0 : index
    %c0_2 = arith.constant 0 : index
    %2 = vector.load %arg1[%c0_1, %c0_2] : memref<8x128xi32, #tpu.memory_space<vmem>>, vector<8x128xi32>
    tpu.vector_store %arg1[%c0_1, %c0_2], %1 {strides = array<i32>} : memref<8x128xi32, #tpu.memory_space<vmem>>, vector<8x128xi32>,
    return
  }
}

</mosaic_0001>

<bundles_post_ra>
// kernel: tpu_custom_call.1
= control target key start
LH: loop header
LB: loop body
LE: loop exit
PB: predicated region body
PF: predicated region fallthrough
CT: control target
= control target key end

     0   :  { %6 = vsyncpa [#allocation3], 0  ;;  %s125_s0 = inlined_call_operand.hbm [shape: s32[8,128], index: 0, kind: input, shape index: {}]   ;;  %s126_s1 = inlined_call_operand.hbm [shape: s32[8,128], index: 1, kind: output, shape index: {}]  }
   0x1   :  { %7 = vsyncpa [#allocation4], 0  ;;  %s89_s6 = smov [#allocation2]   ;;  %s41_s10 = scalar_lea.hbm %s125_s0, 128 }
   0x2   :  { %s14_s7 = sshll.u32 %s89_s6, 4  ;;  %p42_p0 = scmp.ne.s32.totalorder %s125_s0, %s41_s10  ;;  %s15_s7 = int_to_ptr.vmem [resolvable:$true] %s14_s7 }
   0x3   :  { %p45_p1 = scmp.lt.u32.totalorder %s41_s10, %s125_s0 }
   0x5   :  { %p47_p2 = pnand %p45_p1, %p42_p0 }
   0x7   :  { %50 = shalt.err (!%p47_p2)
}
   0x8   :  { %s51_s15 = scalar_lea.vmem %s15_s7, 128  ;;  %p56_p4 = scmp.lt.s32.totalorder %s15_s7, %s15_s7 }
   0x9   :  { %p52_p3 = scmp.ne.s32.totalorder %s15_s7, %s51_s15  ;;  %p57_p5 = scmp.lt.s32.totalorder %s51_s15, %s51_s15 }
   0xb   :  { %p58_p6 = por %p57_p5, %p56_p4 }
   0xd   :  { %p59_p7 = pnand %p58_p6, %p52_p3 }
   0xf   :  { %62 = shalt.err (!%p59_p7)
}
  0x10   :  { %17 = dma.hbm_to_vmem [thread:$0]  %s125_s0, 128, %s15_s7, [#allocation3]  }
  0x11   :  { %85 = dma.done.wait [#allocation3], 128  }
  0x12   :  { %86 = vsyncadd [#allocation3], 4294967168  ;;  %s90_s18 = smov [#allocation5]   ;;  %v21_v0 = vld [vmem:[#allocation2] sm:$0xff] }
  0x13   :  { %s30_s19 = sshll.u32 %s90_s18, 4  ;;  %v22_v1 = vrot.slane %v21_v0, 7  ;;  %s31_s19 = int_to_ptr.vmem [resolvable:$true] %s30_s19 }
  0x14   :  { %s63_s20 = scalar_lea.vmem %s31_s19, 128  ;;  %p68_p9 = scmp.lt.s32.totalorder %s31_s19, %s31_s19 }
  0x15   :  { %23 = vst [vmem:[#allocation5] sm:$0xff] %v22_v1  ;;  %p64_p8 = scmp.ne.s32.totalorder %s31_s19, %s63_s20  ;;  %p69_p10 = scmp.lt.s32.totalorder %s63_s20, %s63_s20 }
  0x17   :  { %p70_p11 = por %p69_p10, %p68_p9 }
  0x19   :  { %p71_p12 = pnand %p70_p11, %p64_p8 }
  0x1b   :  { %74 = shalt.err (!%p71_p12)
}
  0x1c   :  { %s75_s23 = scalar_lea.hbm %s126_s1, 128 }
  0x1d   :  { %p76_p13 = scmp.ne.s32.totalorder %s126_s1, %s75_s23  ;;  %p79_p0 = scmp.lt.u32.totalorder %s75_s23, %s126_s1 }
  0x1f   :  { %p81_p1 = pnand %p79_p0, %p76_p13 }
  0x21   :  { %84 = shalt.err (!%p81_p1)
}
  0x22   :  { %33 = dma.vmem_to_hbm [thread:$0]  %s31_s19, 128, %s126_s1, [#allocation4]  }
  0x23   :  { %87 = dma.done.wait [#allocation4], 128  }
  0x24   :  { %88 = vsyncadd [#allocation4], 4294967168 }
  0x25   :  { %37 = vsyncpa [#allocation3], 1 }
  0x26   :  { %38 = vsyncpa [#allocation4], 1 }

</bundles_post_ra>
